<compile_context>
chip_gen: v7x
topology: tpu7x:2x2x1
jax: 0.10.0
libtpu: 0.0.40
codegen_flags: <defaults>
</compile_context>

<pallas_src>
import functools

import jax
import jax.numpy as jnp
from jax.experimental import pallas as pl
from jax.experimental.pallas import tpu as pltpu


def _projection_head_kernel(x_ref, w1_ref, b1_ref, w2_ref, b2_ref, o_ref):
    """Fused MLP + L2-normalize on one batch tile.

    x_ref:  (TB, D_in)   VMEM (streamed / double-buffered)
    w1_ref: (D_in, H)    VMEM (resident across all batch tiles)
    b1_ref: (1, H)       VMEM (resident)
    w2_ref: (H, D_out)   VMEM (resident)
    b2_ref: (1, D_out)   VMEM (resident)
    o_ref:  (TB, D_out)  VMEM (streamed)
    """
    # Linear 1 + ReLU. Explicit precision: true-f32 MXU passes for f32 inputs,
    # native single-pass for bf16 inputs. Accumulate in f32 either way.
    prec1 = (jax.lax.Precision.HIGHEST if x_ref.dtype == jnp.float32
             else jax.lax.Precision.DEFAULT)
    h = jnp.dot(x_ref[...], w1_ref[...],
                preferred_element_type=jnp.float32, precision=prec1)
    h = jnp.maximum(h + b1_ref[...].astype(jnp.float32), 0.0)

    # Linear 2.
    if w2_ref.dtype == jnp.float32:
        lhs2 = h
        prec2 = jax.lax.Precision.HIGHEST
    else:
        # Intentional precision deviation for bf16 weights: cast the f32
        # accumulator down to the weight dtype for the second MXU pass.
        lhs2 = h.astype(w2_ref.dtype)
        prec2 = jax.lax.Precision.DEFAULT
    y = jnp.dot(lhs2, w2_ref[...],
                preferred_element_type=jnp.float32, precision=prec2)
    y = y + b2_ref[...].astype(jnp.float32)

    # F.normalize(y, dim=-1): y / max(||y||, 1e-12) == y * rsqrt(max(||y||^2, 1e-24)).
    sq = jnp.sum(y * y, axis=-1, keepdims=True)
    inv_norm = jax.lax.rsqrt(jnp.maximum(sq, 1e-24))
    o_ref[...] = (y * inv_norm).astype(o_ref.dtype)


def _round_up(n, m):
    return ((n + m - 1) // m) * m


def _choose_batch_tile(B, tb_max):
    """Batch tile: multiple of 8, <= tb_max, big enough to hide per-step overhead,
    but balanced so large batches give >=4 grid steps (>=2 per TC on v7x)."""
    full = _round_up(B, 8)
    tb = min(_round_up(tb_max, 8), full)
    min_tile = 512
    steps = -(-B // tb)
    if B > 2 * min_tile and steps < 4:
        tb = max(_round_up(-(-B // 4), 8), min_tile)
    return tb


def _vmem_budget_bytes(tb, d_in, h, d_out, act_itemsize, w_itemsize):
    # Resident weights/biases: count double-buffered (Pallas may allocate 2 bufs
    # per input spec even when the block index never changes).
    weights = 2 * (d_in * h + h * d_out + h + d_out) * w_itemsize
    # Streamed x and out tiles, double-buffered each.
    io_tiles = 2 * tb * (d_in + d_out) * act_itemsize
    # f32 intermediates (h, y) during compute.
    interm = 2 * tb * (h + d_out) * 4
    need = weights + io_tiles + interm
    # Generous headroom, capped at 48 MiB (v7x physical VMEM is 64 MiB per TC).
    return int(min(max(2 * need, 16 << 20), 48 << 20))


@functools.partial(jax.jit, static_argnames=("tb",))
def projection_head_forward(x, w1, b1, w2, b2, *, tb=1024):
    """x: (B, D_in) -> (B, D_out). Batch-tiled, weights held resident in VMEM."""
    B, D_in = x.shape
    H = w1.shape[1]
    D_out = w2.shape[1]

    TB = _choose_batch_tile(B, tb)
    # Ragged last tile: Pallas masks out-of-bounds writes and each row's compute
    # is independent, so no host-side padding copy is needed.
    grid = (pl.cdiv(B, TB),)

    act_itemsize = jnp.dtype(x.dtype).itemsize
    w_itemsize = jnp.dtype(w1.dtype).itemsize

    cost = pl.CostEstimate(
        flops=int(2 * B * (D_in * H + H * D_out) + 4 * B * D_out),
        transcendentals=int(B),
        bytes_accessed=int(B * (D_in + D_out) * act_itemsize
                           + (D_in * H + H * D_out + H + D_out) * w_itemsize),
    )
    vmem_limit = _vmem_budget_bytes(TB, D_in, H, D_out, act_itemsize, w_itemsize)

    out = pl.pallas_call(
        _projection_head_kernel,
        out_shape=jax.ShapeDtypeStruct((B, D_out), x.dtype),
        grid_spec=pltpu.PrefetchScalarGridSpec(
            num_scalar_prefetch=0,
            grid=grid,
            in_specs=[
                pl.BlockSpec((TB, D_in), lambda i: (i, 0)),   # streamed / pipelined
                pl.BlockSpec((D_in, H), lambda i: (0, 0)),    # resident (index never changes)
                pl.BlockSpec((1, H), lambda i: (0, 0)),       # resident
                pl.BlockSpec((H, D_out), lambda i: (0, 0)),   # resident
                pl.BlockSpec((1, D_out), lambda i: (0, 0)),   # resident
            ],
            out_specs=pl.BlockSpec((TB, D_out), lambda i: (i, 0)),
        ),
        compiler_params=pltpu.CompilerParams(
            dimension_semantics=("parallel",),   # v7x: shard batch tiles over 2 TCs
            vmem_limit_bytes=vmem_limit,
        ),
        cost_estimate=cost,
    )(x, w1, b1, w2, b2)
    return out


def init_projection_head_params(key, input_dim=128, hidden_dim=128, output_dim=128,
                                dtype=jnp.float32):
    """Deterministic init mimicking nn.Linear's uniform(-1/sqrt(fan_in), 1/sqrt(fan_in)).

    Weights are stored transposed relative to PyTorch: (in_features, out_features).
    """
    k1, k2, k3, k4 = jax.random.split(key, 4)
    bound1 = 1.0 / float(jnp.sqrt(jnp.asarray(input_dim, jnp.float32)))
    bound2 = 1.0 / float(jnp.sqrt(jnp.asarray(hidden_dim, jnp.float32)))
    w1 = jax.random.uniform(k1, (input_dim, hidden_dim), dtype, -bound1, bound1)
    b1 = jax.random.uniform(k2, (1, hidden_dim), dtype, -bound1, bound1)
    w2 = jax.random.uniform(k3, (hidden_dim, output_dim), dtype, -bound2, bound2)
    b2 = jax.random.uniform(k4, (1, output_dim), dtype, -bound2, bound2)
    return w1, b1, w2, b2


def projection_head_ref(x, w1, b1, w2, b2):
    """Pure-JAX reference matching PyTorch fp32 semantics (explicit HIGHEST precision)."""
    h = jnp.maximum(
        jnp.dot(x, w1, precision=jax.lax.Precision.HIGHEST) + b1, 0.0)
    y = jnp.dot(h, w2, precision=jax.lax.Precision.HIGHEST) + b2
    norm = jnp.sqrt(jnp.sum(y * y, axis=-1, keepdims=True))
    return y / jnp.maximum(norm, 1e-12)


if __name__ == "__main__":
    key = jax.random.PRNGKey(0)
    k_params, k_x = jax.random.split(key)

    input_dim = hidden_dim = output_dim = 128   # module defaults
    batch = 32                                  # small demo shape

    w1, b1, w2, b2 = init_projection_head_params(
        k_params, input_dim, hidden_dim, output_dim)
    x = jax.random.normal(k_x, (batch, input_dim), jnp.float32)

    out = jax.block_until_ready(projection_head_forward(x, w1, b1, w2, b2))
    ref = projection_head_ref(x, w1, b1, w2, b2)
    assert out.shape == (batch, output_dim)
    assert jnp.allclose(out, ref, atol=2e-5, rtol=2e-5), "mismatch vs reference"
    assert jnp.allclose(jnp.linalg.norm(out, axis=-1), 1.0, atol=1e-4)

    # Multi-tile path with a ragged last tile (grid=(3,), last tile half-empty).
    x2 = jax.random.normal(jax.random.PRNGKey(1), (40, input_dim), jnp.float32)
    out2 = jax.block_until_ready(projection_head_forward(x2, w1, b1, w2, b2, tb=16))
    ref2 = projection_head_ref(x2, w1, b1, w2, b2)
    assert jnp.allclose(out2, ref2, atol=2e-5, rtol=2e-5), "mismatch (ragged multi-tile)"

    # Batch not a multiple of the sublane width (8) -- no host padding needed.
    x3 = jax.random.normal(jax.random.PRNGKey(2), (13, input_dim), jnp.float32)
    out3 = jax.block_until_ready(projection_head_forward(x3, w1, b1, w2, b2, tb=16))
    ref3 = projection_head_ref(x3, w1, b1, w2, b2)
    assert jnp.allclose(out3, ref3, atol=2e-5, rtol=2e-5), "mismatch (non-aligned batch)"

    print("KERNEL_OK")
</pallas_src>

<mosaic_0001>
module attributes {stable_mosaic.version = 11 : i64} {
  func.func @_projection_head_kernel(%arg0: i32, %arg1: memref<32x128xf32, #tpu.memory_space<vmem>>, %arg2: memref<128x128xf32, #tpu.memory_space<vmem>>, %arg3: memref<1x128xf32, #tpu.memory_space<vmem>>, %arg4: memref<128x128xf32, #tpu.memory_space<vmem>>, %arg5: memref<1x128xf32, #tpu.memory_space<vmem>>, %arg6: memref<32x128xf32, #tpu.memory_space<vmem>>) attributes {dimension_semantics = [#tpu.dimension_semantics<parallel>], iteration_bounds = array<i64: 1>, scalar_prefetch = 0 : i64, scratch_operands = 0 : i64, tpu.core_type = #tpu.core_type<tc>, window_params = [{transform_indices = @transform_0, window_bounds = array<i64: 32, 128>}, {pipeline_mode = #tpu.pipeline_mode<synchronous>, transform_indices = @transform_1, window_bounds = array<i64: 128, 128>}, {pipeline_mode = #tpu.pipeline_mode<synchronous>, transform_indices = @transform_2, window_bounds = array<i64: 1, 128>}, {pipeline_mode = #tpu.pipeline_mode<synchronous>, transform_indices = @transform_3, window_bounds = array<i64: 128, 128>}, {pipeline_mode = #tpu.pipeline_mode<synchronous>, transform_indices = @transform_4, window_bounds = array<i64: 1, 128>}, {transform_indices = @transform_5, window_bounds = array<i64: 32, 128>}]} {
    %c0 = arith.constant 0 : index
    %c0_0 = arith.constant 0 : index
    %0 = vector.load %arg1[%c0, %c0_0] : memref<32x128xf32, #tpu.memory_space<vmem>>, vector<32x128xf32>
    %c0_1 = arith.constant 0 : index
    %c0_2 = arith.constant 0 : index
    %1 = vector.load %arg2[%c0_1, %c0_2] : memref<128x128xf32, #tpu.memory_space<vmem>>, vector<128x128xf32>
    %cst = arith.constant dense<0.000000e+00> : vector<32x128xf32>
    %2 = tpu.matmul %0, %1, %cst {dimension_numbers = #tpu.dot_dimension_numbers<[1], [0], [0], [1], [0, 0, 1, 1], [], []>, precision = #tpu.contract_precision<fp32>} : vector<32x128xf32>, vector<128x128xf32>, vector<32x128xf32> -> vector<32x128xf32>
    %c0_3 = arith.constant 0 : index
    %c0_4 = arith.constant 0 : index
    %3 = vector.load %arg3[%c0_3, %c0_4] : memref<1x128xf32, #tpu.memory_space<vmem>>, vector<1x128xf32>
    %4 = vector.broadcast %3 : vector<1x128xf32> to vector<32x128xf32>
    %5 = arith.addf %2, %4 : vector<32x128xf32>
    %cst_5 = arith.constant 0.000000e+00 : f32
    %6 = vector.broadcast %cst_5 : f32 to vector<32x128xf32>
    %7 = arith.maximumf %5, %6 : vector<32x128xf32>
    %c0_6 = arith.constant 0 : index
    %c0_7 = arith.constant 0 : index
    %8 = vector.load %arg4[%c0_6, %c0_7] : memref<128x128xf32, #tpu.memory_space<vmem>>, vector<128x128xf32>
    %cst_8 = arith.constant dense<0.000000e+00> : vector<32x128xf32>
    %9 = tpu.matmul %7, %8, %cst_8 {dimension_numbers = #tpu.dot_dimension_numbers<[1], [0], [0], [1], [0, 0, 1, 1], [], []>, precision = #tpu.contract_precision<fp32>} : vector<32x128xf32>, vector<128x128xf32>, vector<32x128xf32> -> vector<32x128xf32>
    %c0_9 = arith.constant 0 : index
    %c0_10 = arith.constant 0 : index
    %10 = vector.load %arg5[%c0_9, %c0_10] : memref<1x128xf32, #tpu.memory_space<vmem>>, vector<1x128xf32>
    %11 = vector.broadcast %10 : vector<1x128xf32> to vector<32x128xf32>
    %12 = arith.addf %9, %11 : vector<32x128xf32>
    %13 = arith.mulf %12, %12 : vector<32x128xf32>
    %cst_11 = arith.constant dense<0.000000e+00> : vector<32xf32>
    %14 = vector.multi_reduction <add>, %13, %cst_11 [1] : vector<32x128xf32> to vector<32xf32>
    %15 = vector.shape_cast %14 : vector<32xf32> to vector<32x1xf32>
    %cst_12 = arith.constant 1.000000e-24 : f32
    %16 = vector.broadcast %cst_12 : f32 to vector<32x1xf32>
    %17 = arith.maximumf %15, %16 : vector<32x1xf32>
    %18 = math.rsqrt %17 : vector<32x1xf32>
    %19 = vector.broadcast %18 : vector<32x1xf32> to vector<32x128xf32>
    %20 = arith.mulf %12, %19 : vector<32x128xf32>
    %c0_13 = arith.constant 0 : index
    %c0_14 = arith.constant 0 : index
    %21 = vector.load %arg6[%c0_13, %c0_14] : memref<32x128xf32, #tpu.memory_space<vmem>>, vector<32x128xf32>
    tpu.vector_store %arg6[%c0_13, %c0_14], %20 {strides = array<i32>} : memref<32x128xf32, #tpu.memory_space<vmem>>, vector<32x128xf32>,
    return
  }
  func.func @transform_0(%arg0: i32) -> (i32, i32) {
    %c0_i32 = arith.constant 0 : i32
    %c0_i32_0 = arith.constant 0 : i32
    return %arg0, %c0_i32 : i32, i32
  }
  func.func @transform_1(%arg0: i32) -> (i32, i32) {
    %c0_i32 = arith.constant 0 : i32
    %c0_i32_0 = arith.constant 0 : i32
    %c0_i32_1 = arith.constant 0 : i32
    return %c0_i32, %c0_i32_0 : i32, i32
  }
  func.func @transform_2(%arg0: i32) -> (i32, i32) {
    %c0_i32 = arith.constant 0 : i32
    %c0_i32_0 = arith.constant 0 : i32
    %c0_i32_1 = arith.constant 0 : i32
    return %c0_i32, %c0_i32_0 : i32, i32
  }
  func.func @transform_3(%arg0: i32) -> (i32, i32) {
    %c0_i32 = arith.constant 0 : i32
    %c0_i32_0 = arith.constant 0 : i32
    %c0_i32_1 = arith.constant 0 : i32
    return %c0_i32, %c0_i32_0 : i32, i32
  }
  func.func @transform_4(%arg0: i32) -> (i32, i32) {
    %c0_i32 = arith.constant 0 : i32
    %c0_i32_0 = arith.constant 0 : i32
    %c0_i32_1 = arith.constant 0 : i32
    return %c0_i32, %c0_i32_0 : i32, i32
  }
  func.func @transform_5(%arg0: i32) -> (i32, i32) {
    %c0_i32 = arith.constant 0 : i32
    %c0_i32_0 = arith.constant 0 : i32
    return %arg0, %c0_i32 : i32, i32
  }
}

</mosaic_0001>

<bundles_post_ra>
// kernel: projection_head_forward.1
= control target key start
LH: loop header
LB: loop body
LE: loop exit
PB: predicated region body
PF: predicated region fallthrough
CT: control target
= control target key end

     0   :  { %10 = vsyncpa [#allocation3], 0  ;;  %s3696_s0 = inlined_call_operand.hbm [shape: f32[32,128], index: 0, kind: input, shape index: {}]   ;;  %s3697_s1 = inlined_call_operand.hbm [shape: f32[128,128], index: 1, kind: input, shape index: {}]   ;;  %s3698_s2 = inlined_call_operand.vmem [shape: f32[1,128], index: 2, kind: input, shape index: {}]   ;;  %s3699_s3 = inlined_call_operand.hbm [shape: f32[128,128], index: 3, kind: input, shape index: {}]   ;;  %s3700_s4 = inlined_call_operand.vmem [shape: f32[1,128], index: 4, kind: input, shape index: {}]   ;;  %s3701_s5 = inlined_call_operand.hbm [shape: f32[32,128], index: 5, kind: output, shape index: {}]  }
   0x1   :  { %11 = vsyncpa [#allocation6], 0 }
   0x2   :  { %12 = vsyncpa [#allocation4], 0  ;;  %s2940_s18 = smov [#allocation5]   ;;  %s2941_s20 = smov [#allocation2]  }
   0x3   :  { %s30_s19 = sshll.u32 %s2940_s18, 4  ;;  %s18_s21 = sshll.u32 %s2941_s20, 4  ;;  %s31_s19 = int_to_ptr.vmem [resolvable:$true] %s30_s19  ;;  %s2976_s21 = int_to_ptr.vmem [resolvable:$true] %s18_s21 }
   0x4   :  { %s2846_s24 = scalar_lea.hbm %s3697_s1, 2048 }
   0x5   :  { %p2847_p0 = scmp.ne.s32.totalorder %s3697_s1, %s2846_s24  ;;  %p2850_p1 = scmp.lt.u32.totalorder %s2846_s24, %s3697_s1 }
   0x7   :  { %p2852_p2 = pnand %p2850_p1, %p2847_p0 }
   0x9   :  { %2855 = shalt.err (!%p2852_p2)
}
   0xa   :  { %s2856_s29 = scalar_lea.vmem %s31_s19, 2048  ;;  %p2861_p4 = scmp.lt.s32.totalorder %s31_s19, %s31_s19 }
   0xb   :  { %p2857_p3 = scmp.ne.s32.totalorder %s31_s19, %s2856_s29  ;;  %p2862_p5 = scmp.lt.s32.totalorder %s2856_s29, %s2856_s29 }
   0xd   :  { %p2863_p6 = por %p2862_p5, %p2861_p4 }
   0xf   :  { %p2864_p7 = pnand %p2863_p6, %p2857_p3 }
  0x11   :  { %2867 = shalt.err (!%p2864_p7)
}
  0x12   :  { %s2942_s30 = smov 128   ;;  %s2943_s6 = smov 8  }
  0x13   :  { %36 = dma.hbm_to_vmem [thread:$0]  %s3697_s1, 2048, %s31_s19, [#allocation6], %s2942_s30, %s2942_s30, %s2943_s6  }
  0x14   :  { %s2868_s11 = scalar_lea.hbm %s3696_s0, 512 }
  0x15   :  { %p2869_p8 = scmp.ne.s32.totalorder %s3696_s0, %s2868_s11  ;;  %p2872_p9 = scmp.lt.u32.totalorder %s2868_s11, %s3696_s0 }
  0x17   :  { %p2874_p10 = pnand %p2872_p9, %p2869_p8 }
  0x19   :  { %2877 = shalt.err (!%p2874_p10)
}
  0x1a   :  { %s2878_s16 = scalar_lea.vmem %s2976_s21, 512  ;;  %p2883_p12 = scmp.lt.s32.totalorder %s2976_s21, %s2976_s21 }
  0x1b   :  { %p2879_p11 = scmp.ne.s32.totalorder %s2976_s21, %s2878_s16  ;;  %p2884_p13 = scmp.lt.s32.totalorder %s2878_s16, %s2878_s16 }
  0x1d   :  { %p2885_p0 = por %p2884_p13, %p2883_p12 }
  0x1f   :  { %p2886_p1 = pnand %p2885_p0, %p2879_p11 }
  0x21   :  { %2889 = shalt.err (!%p2886_p1)
}
  0x22   :  { %24 = dma.hbm_to_vmem [thread:$0]  %s3696_s0, 512, %s2976_s21, [#allocation3], %s2942_s30, %s2942_s30, %s2943_s6  }
  0x23   :  { %s2944_s18 = smov [#allocation7]   ;;  %s2890_s23 = scalar_lea.hbm %s3699_s3, 2048 }
  0x24   :  { %s44_s19 = sshll.u32 %s2944_s18, 4  ;;  %p2891_p2 = scmp.ne.s32.totalorder %s3699_s3, %s2890_s23  ;;  %s45_s19 = int_to_ptr.vmem [resolvable:$true] %s44_s19 }
  0x25   :  { %p2894_p3 = scmp.lt.u32.totalorder %s2890_s23, %s3699_s3 }
  0x27   :  { %p2896_p4 = pnand %p2894_p3, %p2891_p2 }
  0x29   :  { %2899 = shalt.err (!%p2896_p4)
}
  0x2a   :  { %s2900_s28 = scalar_lea.vmem %s45_s19, 2048  ;;  %p2905_p6 = scmp.lt.s32.totalorder %s45_s19, %s45_s19 }
  0x2b   :  { %p2901_p5 = scmp.ne.s32.totalorder %s45_s19, %s2900_s28  ;;  %p2906_p7 = scmp.lt.s32.totalorder %s2900_s28, %s2900_s28 }
  0x2d   :  { %p2907_p8 = por %p2906_p7, %p2905_p6 }
  0x2f   :  { %p2908_p9 = pnand %p2907_p8, %p2901_p5 }
  0x31   :  { %2911 = shalt.err (!%p2908_p9)
}
  0x32   :  { %50 = dma.hbm_to_vmem [thread:$0]  %s3699_s3, 2048, %s45_s19, [#allocation6], %s2942_s30, %s2942_s30, %s2943_s6  }
  0x33   :  { %2934 = dma.done.wait [#allocation3], 512  }
  0x34   :  { %2935 = vsyncadd [#allocation3], 4294966784 }
  0x35   :  { %2936 = dma.done.wait [#allocation6], 4096  }
  0x36   :  { %2937 = vsyncadd [#allocation6], 4294963200  ;;  %v66_v0 = vld [vmem:[#allocation5] sm:$0xff]  ;;  %v67_v1 = vld [vmem:[#allocation5 + $0x8] sm:$0xff] }
  0x37   :  { %v68_v2 = vld [vmem:[#allocation5 + $0x10] sm:$0xff]  ;;  %v90_v3 = vand.u32 4294901760, %v66_v0  ;;  %v93_v4 = vand.u32 4294901760, %v67_v1  ;;  %v69_v5 = vld [vmem:[#allocation5 + $0x18] sm:$0xff]  ;;  %v70_v7 = vld [vmem:[#allocation5 + $0x20] sm:$0xff] }
  0x38   :  { %v96_v6 = vand.u32 4294901760, %v68_v2  ;;  %v71_v8 = vld [vmem:[#allocation5 + $0x28] sm:$0xff]  ;;  %v99_v9 = vand.u32 4294901760, %v69_v5  ;;  %v102_v11 = vand.u32 4294901760, %v70_v7  ;;  %v3032_v14 = vld [vmem:[#allocation5 + $0x30] sm:$0xff]  ;;  %v3034_v15 = vld [vmem:[#allocation5 + $0x38] sm:$0xff] }
  0x39   :  { %v3028_v10 = vpack.c.bf16 %v93_v4, %v90_v3  ;;  %v105_v12 = vand.u32 4294901760, %v71_v8  ;;  %v62_v16 = vld [vmem:[#allocation2] sm:$0xff]  ;;  %v108_v19 = vand.u32 4294901760, %v3032_v14  ;;  %v111_v20 = vand.u32 4294901760, %v3034_v15  ;;  %v3047_v22 = vld [vmem:[#allocation5 + $0x48] sm:$0xff]  ;;  %v76_v31 = vld [vmem:[#allocation5 + $0x50] sm:$0xff] }
  0x3a   :  { %v3030_v13 = vpack.c.bf16 %v99_v9, %v96_v6  ;;  %v3038_v17 = vand.u32 4294901760, %v62_v16  ;;  %v3045_v21 = vld [vmem:[#allocation5 + $0x40] sm:$0xff]  ;;  %v63_v24 = vld [vmem:[#allocation2 + $0x8] sm:$0xff]  ;;  %v3054_v26 = vsub.f32 %v66_v0, %v90_v3  ;;  %v3056_v27 = vsub.f32 %v67_v1, %v93_v4  ;;  %v77_v32 = vld [vmem:[#allocation5 + $0x58] sm:$0xff] }
  0x3b   :  { %2401 = vmatprep.subr.bf16.mxu0 %v3028_v10  ;;  %v3041_v18 = vpack.c.bf16 %v105_v12, %v102_v11  ;;  %v3063_v28 = vpack.c.bf16 %v111_v20, %v108_v19  ;;  %v114_v29 = vand.u32 4294901760, %v3045_v21  ;;  %v117_v30 = vand.u32 4294901760, %v3047_v22  ;;  %v78_v37 = vld [vmem:[#allocation5 + $0x60] sm:$0xff]  ;;  %v79_v43 = vld [vmem:[#allocation5 + $0x68] sm:$0xff]  ;;  %v80_v44 = vld [vmem:[#allocation5 + $0x70] sm:$0xff] }
  0x3c   :  { %2403 = vmatpush3.bf16.msra.mxu0 %v3028_v10  ;;  %v3050_v23 = vsub.f32 %v62_v16, %v3038_v17  ;;  %v3070_v34 = vand.u32 4294901760, %v63_v24  ;;  %v3072_v35 = vsub.f32 %v68_v2, %v96_v6  ;;  %v120_v36 = vand.u32 4294901760, %v76_v31  ;;  %v81_v47 = vld [vmem:[#allocation5 + $0x78] sm:$0xff]  ;;  %v64_v63 = vld [vmem:[#allocation2 + $0x10] sm:$0xff] }
  0x3d   :  { %2405 = vmatprep.subr.bf16.mxu0 %v3030_v13  ;;  %v213_v39 = vand.u32 4294901760, %v3054_v26  ;;  %v220_v40 = vand.u32 4294901760, %v3056_v27  ;;  %v3078_v41 = vpack.c.bf16 %v117_v30, %v114_v29  ;;  %v123_v42 = vand.u32 4294901760, %v77_v32 }
  0x3e   :  { %v3704_v25 = vand.u32 4294901760, %v3050_v23  ;;  %v3080_v45 = vsub.f32 %v69_v5, %v99_v9  ;;  %v3082_v46 = vsub.f32 %v70_v7, %v102_v11  ;;  %v3085_v48 = vsub.f32 %v63_v24, %v3070_v34  ;;  %v65_v7 = vld [vmem:[#allocation2 + $0x18] sm:$0xff] }
  0x3f   :  { %v227_v49 = vand.u32 4294901760, %v3072_v35  ;;  %v3088_v50 = vsub.f32 %v71_v8, %v105_v12  ;;  %v126_v51 = vand.u32 4294901760, %v78_v37  ;;  %v129_v52 = vand.u32 4294901760, %v79_v43 }
  0x40   :  { %2407 = vmatpush3.bf16.msra.mxu0 %v3030_v13  ;;  %v173_v33 = vsub.f32 %v3050_v23, %v3704_v25  ;;  %v132_v53 = vand.u32 4294901760, %v80_v44  ;;  %v214_v54 = vsub.f32 %v3054_v26, %v213_v39  ;;  %v221_v55 = vsub.f32 %v3056_v27, %v220_v40 }
  0x41   :  { %2409 = vmatprep.subr.bf16.mxu0 %v3041_v18  ;;  %v3098_v56 = vpack.c.bf16 %v123_v42, %v120_v36  ;;  %v135_v57 = vand.u32 4294901760, %v81_v47  ;;  %v234_v58 = vand.u32 4294901760, %v3080_v45  ;;  %v241_v59 = vand.u32 4294901760, %v3082_v46 }
  0x42   :  { %v174_v38 = vand.u32 4294901760, %v173_v33  ;;  %v3703_v60 = vand.u32 4294901760, %v3085_v48  ;;  %v3106_v61 = vsub.f32 %v3072_v35, %v227_v49  ;;  %v248_v62 = vand.u32 4294901760, %v3088_v50 }
  0x43   :  { %v3110_v0 = vpack.c.bf16 %v129_v52, %v126_v51  ;;  %v215_v1 = vand.u32 4294901760, %v214_v54  ;;  %v222_v2 = vand.u32 4294901760, %v221_v55  ;;  %v3113_v3 = vpack.c.bf16 %v135_v57, %v132_v53 }
  0x44   :  { %2411 = vmatpush3.bf16.msra.mxu0 %v3041_v18  ;;  %1976 = vmatprep.mubr.f32.mxu0 %v174_v38  ;;  %v235_v4 = vsub.f32 %v3080_v45, %v234_v58  ;;  %v242_v5 = vsub.f32 %v3082_v46, %v241_v59  ;;  %v3117_v6 = vand.u32 4294901760, %v64_v63  ;;  %v183_v8 = vsub.f32 %v3085_v48, %v3703_v60 }
  0x45   :  { %2413 = vmatprep.subr.bf16.mxu0 %v3063_v28  ;;  %v229_v9 = vand.u32 4294901760, %v3106_v61  ;;  %v249_v11 = vsub.f32 %v3088_v50, %v248_v62  ;;  %v3127_v12 = vsub.f32 %v3032_v14, %v108_v19  ;;  %v3132_v16 = vsub.f32 %v3034_v15, %v111_v20 }
  0x46   :  { %v3135_v24 = vsub.f32 %v3045_v21, %v114_v29  ;;  %v3138_v33 = vsub.f32 %v3047_v22, %v117_v30  ;;  %v3141_v38 = vsub.f32 %v64_v63, %v3117_v6  ;;  %v2432_v54 = vpack.c.bf16 %v222_v2, %v215_v1 }
  0x47   :  { %v3144_v55 = vsub.f32 %v76_v31, %v120_v36  ;;  %v3146_v14 = vsub.f32 %v77_v32, %v123_v42  ;;  %v3148_v19 = vand.u32 4294901760, %v65_v7  ;;  %v3151_v15 = vsub.f32 %v78_v37, %v126_v51 }
  0x48   :  { %2415 = vmatpush3.bf16.msra.mxu0 %v3063_v28  ;;  %v3153_v20 = vsub.f32 %v79_v43, %v129_v52  ;;  %v3702_v21 = vand.u32 4294901760, %v3141_v38  ;;  %v3156_v22 = vsub.f32 %v80_v44, %v132_v53  ;;  %v184_v29 = vand.u32 4294901760, %v183_v8 }
  0x49   :  { %2417 = vmatprep.subr.bf16.mxu0 %v3078_v41  ;;  %v236_v30 = vand.u32 4294901760, %v235_v4  ;;  %v3158_v61 = vsub.f32 %v81_v47, %v135_v57  ;;  %v3161_v31 = vsub.f32 %v65_v7, %v3148_v19  ;;  %v255_v32 = vand.u32 4294901760, %v3127_v12 }
  0x4a   :  { %v262_v36 = vand.u32 4294901760, %v3132_v16  ;;  %v269_v37 = vand.u32 4294901760, %v3135_v24  ;;  %v276_v42 = vand.u32 4294901760, %v3138_v33  ;;  %v283_v43 = vand.u32 4294901760, %v3144_v55 }
  0x4b   :  { %v290_v44 = vand.u32 4294901760, %v3146_v14  ;;  %v193_v47 = vsub.f32 %v3141_v38, %v3702_v21  ;;  %v3706_v51 = vand.u32 4294901760, %v3161_v31  ;;  %v297_v52 = vand.u32 4294901760, %v3151_v15 }
  0x4c   :  { %2419 = vmatpush3.bf16.msra.mxu0 %v3078_v41  ;;  %v304_v53 = vand.u32 4294901760, %v3153_v20  ;;  %v311_v57 = vand.u32 4294901760, %v3156_v22  ;;  %v3182_v63 = vpack.c.bf16 %v220_v40, %v213_v39  ;;  %v318_v1 = vand.u32 4294901760, %v3158_v61 }
  0x4d   :  { %2421 = vmatprep.subr.bf16.mxu0 %v3098_v56  ;;  %v3187_v2 = vpack.c.bf16 %v234_v58, %v227_v49  ;;  %v3189_v4 = vpack.c.bf16 %v248_v62, %v241_v59  ;;  %v3191_v7 = vpack.c.bf16 %v262_v36, %v255_v32  ;;  %v203_v8 = vsub.f32 %v3161_v31, %v3706_v51 }
  0x4e   :  { %v3196_v21 = vpack.c.bf16 %v276_v42, %v269_v37  ;;  %v3198_v60 = vpack.c.bf16 %v290_v44, %v283_v43  ;;  %v3200_v39 = vpack.c.bf16 %v304_v53, %v297_v52  ;;  %v243_v40 = vand.u32 4294901760, %v242_v5 }
  0x4f   :  { %3722 = vst [vmem:[#allocation12_spill] sm:$0xff] %v3191_v7  ;;  %v250_v25 = vand.u32 4294901760, %v249_v11  ;;  %v194_v49 = vand.u32 4294901760, %v193_v47  ;;  %v3203_v58 = vpack.c.bf16 %v318_v1, %v311_v57  ;;  %v2436_v59 = vpack.c.bf16 %v236_v30, %v229_v9 }
  0x50   :  { %2423 = vmatpush3.bf16.msra.mxu0 %v3098_v56  ;;  %3723 = vst [vmem:[#allocation13_spill] sm:$0xff] %v3196_v21  ;;  %3724 = vst [vmem:[#allocation14_spill] sm:$0xff] %v3198_v60  ;;  %v256_v62 = vsub.f32 %v3127_v12, %v255_v32  ;;  %v263_v7 = vsub.f32 %v3132_v16, %v262_v36  ;;  %v204_v51 = vand.u32 4294901760, %v203_v8 }
  0x51   :  { %2425 = vmatprep.subr.bf16.mxu0 %v3110_v0  ;;  %3725 = vst [vmem:[#allocation15_spill] sm:$0xff] %v3200_v39  ;;  %v2440_v21 = vpack.c.bf16 %v250_v25, %v243_v40  ;;  %v270_v5 = vsub.f32 %v3135_v24, %v269_v37  ;;  %v277_v11 = vsub.f32 %v3138_v33, %v276_v42  ;;  %v3225_v40 = vld [vmem:[#allocation7] sm:$0xff] }
  0x52   :  { %v257_v39 = vand.u32 4294901760, %v256_v62  ;;  %v264_v60 = vand.u32 4294901760, %v263_v7  ;;  %v284_v9 = vsub.f32 %v3144_v55, %v283_v43  ;;  %v291_v25 = vsub.f32 %v3146_v14, %v290_v44 }
  0x53   :  { %v278_v32 = vand.u32 4294901760, %v277_v11  ;;  %v305_v42 = vsub.f32 %v3153_v20, %v304_v53  ;;  %v319_v8 = vsub.f32 %v3158_v61, %v318_v1  ;;  %v2464_v53 = vpack.c.bf16 %v3056_v27, %v3054_v26  ;;  %v3229_v26 = vld [vmem:[#allocation7 + $0x10] sm:$0xff] }
  0x54   :  { %2427 = vmatpush3.bf16.msra.mxu0 %v3110_v0  ;;  %v2444_v30 = vpack.c.bf16 %v264_v60, %v257_v39  ;;  %v285_v37 = vand.u32 4294901760, %v284_v9  ;;  %v292_v47 = vand.u32 4294901760, %v291_v25  ;;  %v312_v60 = vsub.f32 %v3156_v22, %v311_v57 }
  0x55   :  { %2429 = vmatprep.subr.bf16.mxu0 %v3113_v3  ;;  %v306_v7 = vand.u32 4294901760, %v305_v42  ;;  %v2468_v57 = vpack.c.bf16 %v3080_v45, %v3072_v35  ;;  %v2472_v1 = vpack.c.bf16 %v3088_v50, %v3082_v46  ;;  %v887_v27 = vand.u32 4294901760, %v3225_v40  ;;  %v3234_v45 = vld [vmem:[#allocation7 + $0x18] sm:$0xff]  ;;  %v3237_v46 = vld [vmem:[#allocation7 + $0x20] sm:$0xff]  ;;  %v3239_v50 = vld [vmem:[#allocation7 + $0x28] sm:$0xff] }
  0x56   :  { %v2452_v43 = vpack.c.bf16 %v292_v47, %v285_v37  ;;  %v313_v44 = vand.u32 4294901760, %v312_v60  ;;  %v2476_v62 = vpack.c.bf16 %v3132_v16, %v3127_v12  ;;  %v899_v9 = vand.u32 4294901760, %v3237_v46  ;;  %v3260_v12 = vld [vmem:[#allocation7 + $0x38] sm:$0xff]  ;;  %v877_v47 = vld [vmem:[#allocation7 + $0x70] sm:$0xff] }
  0x57   :  { %v2480_v16 = vpack.c.bf16 %v3138_v33, %v3135_v24  ;;  %v2484_v37 = vpack.c.bf16 %v3146_v14, %v3144_v55  ;;  %v2488_v33 = vpack.c.bf16 %v3153_v20, %v3151_v15  ;;  %v2492_v55 = vpack.c.bf16 %v3158_v61, %v3156_v22  ;;  %v3731_v22 = vld [vmem:[#allocation13_spill] sm:$0xff]  ;;  %v878_v42 = vld [vmem:[#allocation7 + $0x78] sm:$0xff] }
  0x58   :  { %2431 = vmatpush3.bf16.msra.mxu0 %v3113_v3  ;;  %v3726_v14 = vand.u32 4294901760, %v3050_v23  ;;  %v3729_v20 = vand.u32 4294901760, %v3161_v31  ;;  %v3733_v61 = vld [vmem:[#allocation15_spill] sm:$0xff] }
  0x59   :  { %2433 = vmatprep.subr.bf16.mxu0 %v2432_v54 }
  0x5b   :  { %1977 = vmatmul.mubr.f32.vlgmr.msra.gmra.mrb[0].mxu0 %v184_v29  ;;  %v271_v29 = vand.u32 4294901760, %v270_v5  ;;  %v896_v5 = vand.u32 4294901760, %v3234_v45 }
  0x5c   :  { %2435 = vmatpush3.bf16.msra.mxu0 %v2432_v54  ;;  %1979 = vmatprep.mubr.f32.mxu0 %v194_v49  ;;  %v298_v54 = vsub.f32 %v3151_v15, %v297_v52  ;;  %v320_v52 = vand.u32 4294901760, %v319_v8  ;;  %v3227_v49 = vld [vmem:[#allocation7 + $0x8] sm:$0xff]  ;;  %v3728_v15 = vand.u32 4294901760, %v3141_v38 }
  0x5d   :  { %2437 = vmatprep.subr.bf16.mxu0 %v2436_v59  ;;  %v2448_v36 = vpack.c.bf16 %v278_v32, %v271_v29  ;;  %v890_v35 = vand.u32 4294901760, %v3227_v49  ;;  %v3258_v32 = vld [vmem:[#allocation7 + $0x30] sm:$0xff] }
  0x5e   :  { %v2460_v39 = vpack.c.bf16 %v320_v52, %v313_v44 }
  0x5f   :  { %1980 = vmatmul.mubr.f32.gmra.mrb[2].mxu0 %v204_v51  ;;  %v299_v51 = vand.u32 4294901760, %v298_v54  ;;  %v3248_v11 = vpack.c.bf16 %v890_v35, %v887_v27  ;;  %v905_v54 = vand.u32 4294901760, %v3258_v32 }
  0x60   :  { %2439 = vmatpush3.bf16.msra.mxu0 %v2436_v59  ;;  %2014 = vmatprep.mubr.f32.mxu0 %v3038_v17  ;;  %v893_v59 = vand.u32 4294901760, %v3229_v26 }
  0x61   :  { %2441 = vmatprep.subr.bf16.mxu0 %v2440_v21  ;;  %2593 = vmatprep.subr.bf16.mxu1 %v3248_v11 }
  0x62   :  { %v3256_v29 = vpack.c.bf16 %v896_v5, %v893_v59  ;;  %2595 = vmatpush3.bf16.msra.mxu1 %v3248_v11 }
  0x64   :  { %2443 = vmatpush3.bf16.msra.mxu0 %v2440_v21  ;;  %v2456_v21 = vpack.c.bf16 %v306_v7, %v299_v51  ;;  %2597 = vmatprep.subr.bf16.mxu1 %v3256_v29  ;;  %v929_v51 = vand.u32 4294901760, %v877_v47 }
  0x65   :  { %2445 = vmatprep.subr.bf16.mxu0 %v2444_v30 }
  0x66   :  { %2599 = vmatpush3.bf16.msra.mxu1 %v3256_v29 }
  0x68   :  { %2447 = vmatpush3.bf16.msra.mxu0 %v2444_v30  ;;  %v902_v30 = vand.u32 4294901760, %v3239_v50 }
  0x69   :  { %2449 = vmatprep.subr.bf16.mxu0 %v2448_v36 }
  0x6a   :  { %v3271_v25 = vpack.c.bf16 %v902_v30, %v899_v9 }
  0x6c   :  { %2451 = vmatpush3.bf16.msra.mxu0 %v2448_v36  ;;  %v908_v36 = vand.u32 4294901760, %v3260_v12  ;;  %2601 = vmatprep.subr.bf16.mxu1 %v3271_v25 }
  0x6d   :  { %2453 = vmatprep.subr.bf16.mxu0 %v2452_v43  ;;  %2603 = vmatpush3.bf16.msra.mxu1 %v3271_v25 }
  0x6e   :  { %v3283_v24 = vpack.c.bf16 %v908_v36, %v905_v54 }
  0x70   :  { %2455 = vmatpush3.bf16.msra.mxu0 %v2452_v43  ;;  %2605 = vmatprep.subr.bf16.mxu1 %v3283_v24  ;;  %v932_v43 = vand.u32 4294901760, %v878_v42 }
  0x71   :  { %2457 = vmatprep.subr.bf16.mxu0 %v2456_v21  ;;  %2607 = vmatpush3.bf16.msra.mxu1 %v3283_v24 }
  0x72   :  { %v3383_v8 = vpack.c.bf16 %v932_v43, %v929_v51 }
  0x74   :  { %2459 = vmatpush3.bf16.msra.mxu0 %v2456_v21 }
  0x75   :  { %2461 = vmatprep.subr.bf16.mxu0 %v2460_v39 }
  0x78   :  { %2463 = vmatpush3.bf16.msra.mxu0 %v2460_v39 }
  0x79   :  { %2465 = vmatprep.subr.bf16.mxu0 %v2464_v53 }
  0x7b   :  { %2015 = vmatmul.mubr.f32.vlgmr.msra.gmra.mrb[0].mxu0 %v3070_v34 }
  0x7c   :  { %2467 = vmatpush3.bf16.msra.mxu0 %v2464_v53  ;;  %2017 = vmatprep.mubr.f32.mxu0 %v3117_v6 }
  0x7d   :  { %2469 = vmatprep.subr.bf16.mxu0 %v2468_v57 }
  0x7f   :  { %2018 = vmatmul.mubr.f32.gmra.mrb[2].mxu0 %v3148_v19 }
  0x80   :  { %2471 = vmatpush3.bf16.msra.mxu0 %v2468_v57  ;;  %2052 = vmatprep.mubr.f32.mxu0 %v3050_v23  ;;  %v3727_v23 = vand.u32 4294901760, %v3085_v48 }
  0x81   :  { %2473 = vmatprep.subr.bf16.mxu0 %v2472_v1 }
  0x84   :  { %2475 = vmatpush3.bf16.msra.mxu0 %v2472_v1 }
  0x85   :  { %2477 = vmatprep.subr.bf16.mxu0 %v2476_v62 }
  0x88   :  { %2479 = vmatpush3.bf16.msra.mxu0 %v2476_v62 }
  0x89   :  { %2481 = vmatprep.subr.bf16.mxu0 %v2480_v16 }
  0x8c   :  { %2483 = vmatpush3.bf16.msra.mxu0 %v2480_v16 }
  0x8d   :  { %2485 = vmatprep.subr.bf16.mxu0 %v2484_v37 }
  0x90   :  { %2487 = vmatpush3.bf16.msra.mxu0 %v2484_v37 }
  0x91   :  { %2489 = vmatprep.subr.bf16.mxu0 %v2488_v33 }
  0x94   :  { %2491 = vmatpush3.bf16.msra.mxu0 %v2488_v33 }
  0x95   :  { %2493 = vmatprep.subr.bf16.mxu0 %v2492_v55 }
  0x98   :  { %2495 = vmatpush3.bf16.msra.mxu0 %v2492_v55 }
  0x99   :  { %2497 = vmatprep.subr.bf16.mxu0 %v3028_v10 }
  0x9b   :  { %2053 = vmatmul.mubr.f32.vlgmr.msra.gmra.mrb[0].mxu0 %v3085_v48  ;;  %v3730_v48 = vld [vmem:[#allocation12_spill] sm:$0xff] }
  0x9c   :  { %2499 = vmatpush3.bf16.msra.mxu0 %v3028_v10  ;;  %2055 = vmatprep.mubr.f32.mxu0 %v3141_v38  ;;  %v3732_v38 = vld [vmem:[#allocation14_spill] sm:$0xff] }
  0x9d   :  { %2501 = vmatprep.subr.bf16.mxu0 %v3030_v13 }
  0x9f   :  { %2056 = vmatmul.mubr.f32.gmra.mrb[2].mxu0 %v3161_v31 }
  0xa0   :  { %2503 = vmatpush3.bf16.msra.mxu0 %v3030_v13  ;;  %2090 = vmatprep.mubr.f32.mxu0 %v3726_v14 }
  0xa1   :  { %2505 = vmatprep.subr.bf16.mxu0 %v3041_v18 }
  0xa4   :  { %2507 = vmatpush3.bf16.msra.mxu0 %v3041_v18 }
  0xa5   :  { %2509 = vmatprep.subr.bf16.mxu0 %v3063_v28 }
  0xa8   :  { %2511 = vmatpush3.bf16.msra.mxu0 %v3063_v28 }
  0xa9   :  { %2513 = vmatprep.subr.bf16.mxu0 %v3078_v41 }
  0xac   :  { %2515 = vmatpush3.bf16.msra.mxu0 %v3078_v41 }
  0xad   :  { %2517 = vmatprep.subr.bf16.mxu0 %v3098_v56 }
  0xb0   :  { %2519 = vmatpush3.bf16.msra.mxu0 %v3098_v56 }
  0xb1   :  { %2521 = vmatprep.subr.bf16.mxu0 %v3110_v0 }
  0xb4   :  { %2523 = vmatpush3.bf16.msra.mxu0 %v3110_v0 }
  0xb5   :  { %2525 = vmatprep.subr.bf16.mxu0 %v3113_v3 }
  0xb8   :  { %2527 = vmatpush3.bf16.msra.mxu0 %v3113_v3 }
  0xb9   :  { %2529 = vmatprep.subr.bf16.mxu0 %v3182_v63 }
  0xbb   :  { %2091 = vmatmul.mubr.f32.vlgmr.msra.gmra.mrb[0].mxu0 %v3727_v23 }
  0xbc   :  { %2531 = vmatpush3.bf16.msra.mxu0 %v3182_v63  ;;  %2093 = vmatprep.mubr.f32.mxu0 %v3728_v15 }
  0xbd   :  { %2533 = vmatprep.subr.bf16.mxu0 %v3187_v2 }
  0xbf   :  { %2094 = vmatmul.mubr.f32.gmra.mrb[2].mxu0 %v3729_v20 }
  0xc0   :  { %2535 = vmatpush3.bf16.msra.mxu0 %v3187_v2  ;;  %2128 = vmatprep.mubr.f32.mxu0 %v3038_v17 }
  0xc1   :  { %2537 = vmatprep.subr.bf16.mxu0 %v3189_v4 }
  0xc4   :  { %2539 = vmatpush3.bf16.msra.mxu0 %v3189_v4  ;;  %v3372_v4 = vsub.f32 %v3225_v40, %v887_v27 }
  0xc5   :  { %2541 = vmatprep.subr.bf16.mxu0 %v3730_v48 }
  0xc6   :  { %v1010_v7 = vand.u32 4294901760, %v3372_v4 }
  0xc8   :  { %2543 = vmatpush3.bf16.msra.mxu0 %v3730_v48  ;;  %v1011_v21 = vsub.f32 %v3372_v4, %v1010_v7 }
  0xc9   :  { %2545 = vmatprep.subr.bf16.mxu0 %v3731_v22 }
  0xca   :  { %v1012_v52 = vand.u32 4294901760, %v1011_v21 }
  0xcc   :  { %2547 = vmatpush3.bf16.msra.mxu0 %v3731_v22 }
  0xcd   :  { %2549 = vmatprep.subr.bf16.mxu0 %v3732_v38 }
  0xd0   :  { %2551 = vmatpush3.bf16.msra.mxu0 %v3732_v38 }
  0xd1   :  { %2553 = vmatprep.subr.bf16.mxu0 %v3733_v61 }
  0xd4   :  { %2555 = vmatpush3.bf16.msra.mxu0 %v3733_v61 }
  0xd5   :  { %2557 = vmatprep.subr.bf16.mxu0 %v3203_v58 }
  0xd8   :  { %2559 = vmatpush3.bf16.msra.mxu0 %v3203_v58  ;;  %v3377_v58 = vsub.f32 %v3227_v49, %v890_v35 }
  0xd9   :  { %2561 = vmatprep.subr.bf16.mxu0 %v3028_v10 }
  0xda   :  { %v1017_v60 = vand.u32 4294901760, %v3377_v58 }
  0xdb   :  { %2129 = vmatmul.mubr.f32.vlgmr.msra.gmra.mrb[0].mxu0 %v3070_v34 }
  0xdc   :  { %2563 = vmatpush3.bf16.msra.mxu0 %v3028_v10  ;;  %2131 = vmatprep.mubr.f32.mxu0 %v3117_v6  ;;  %v871_v10 = vld [vmem:[#allocation7 + $0x40] sm:$0xff]  ;;  %v1018_v44 = vsub.f32 %v3377_v58, %v1017_v60 }
  0xdd   :  { %2565 = vmatprep.subr.bf16.mxu0 %v3030_v13 }
  0xde   :  { %v1019_v39 = vand.u32 4294901760, %v1018_v44  ;;  %v3454_v44 = vpack.c.bf16 %v3377_v58, %v3372_v4 }
  0xdf   :  { %2132 = vmatmul.mubr.f32.gmra.mrb[2].mxu0 %v3148_v19 }
  0xe0   :  { %2567 = vmatpush3.bf16.msra.mxu0 %v3030_v13  ;;  %2166 = vmatprep.mubr.f32.mxu0 %v3038_v17  ;;  %v872_v13 = vld [vmem:[#allocation7 + $0x48] sm:$0xff]  ;;  %v911_v17 = vand.u32 4294901760, %v871_v10  ;;  %v3393_v53 = vpack.c.bf16 %v1019_v39, %v1012_v52 }
  0xe1   :  { %2569 = vmatprep.subr.bf16.mxu0 %v3041_v18 }
  0xe2   :  { %v3396_v57 = vsub.f32 %v871_v10, %v911_v17 }
  0xe4   :  { %2571 = vmatpush3.bf16.msra.mxu0 %v3041_v18  ;;  %v914_v18 = vand.u32 4294901760, %v872_v13  ;;  %v3717_v40 = vand.u32 4294901760, %v3396_v57 }
  0xe5   :  { %2573 = vmatprep.subr.bf16.mxu0 %v3063_v28 }
  0xe6   :  { %v3398_v1 = vsub.f32 %v872_v13, %v914_v18  ;;  %v1067_v27 = vsub.f32 %v3396_v57, %v3717_v40 }
  0xe8   :  { %2575 = vmatpush3.bf16.msra.mxu0 %v3063_v28  ;;  %v3359_v28 = vpack.c.bf16 %v914_v18, %v911_v17  ;;  %v3716_v49 = vand.u32 4294901760, %v3398_v1  ;;  %v1068_v37 = vand.u32 4294901760, %v1067_v27  ;;  %v3458_v52 = vpack.c.bf16 %v3398_v1, %v3396_v57 }
  0xe9   :  { %2577 = vmatprep.subr.bf16.mxu0 %v3078_v41 }
  0xea   :  { %2609 = vmatprep.subr.bf16.mxu1 %v3359_v28  ;;  %v1074_v35 = vsub.f32 %v3398_v1, %v3716_v49 }
  0xeb   :  { %2611 = vmatpush3.bf16.msra.mxu1 %v3359_v28 }
  0xec   :  { %2579 = vmatpush3.bf16.msra.mxu0 %v3078_v41  ;;  %v873_v41 = vld [vmem:[#allocation7 + $0x50] sm:$0xff]  ;;  %v1075_v33 = vand.u32 4294901760, %v1074_v35 }
  0xed   :  { %2581 = vmatprep.subr.bf16.mxu0 %v3098_v56 }
  0xee   :  { %v3414_v23 = vpack.c.bf16 %v1075_v33, %v1068_v37  ;;  %v3475_v37 = vsub.f32 %v3229_v26, %v893_v59  ;;  %v3480_v33 = vsub.f32 %v3234_v45, %v896_v5  ;;  %v3490_v26 = vsub.f32 %v3237_v46, %v899_v9 }
  0xef   :  { %v3495_v45 = vsub.f32 %v3239_v50, %v902_v30 }
  0xf0   :  { %2583 = vmatpush3.bf16.msra.mxu0 %v3098_v56  ;;  %v874_v56 = vld [vmem:[#allocation7 + $0x58] sm:$0xff]  ;;  %v3719_v50 = vand.u32 4294901760, %v3490_v26  ;;  %v3735_v4 = vand.u32 4294901760, %v3490_v26 }
  0xf1   :  { %2585 = vmatprep.subr.bf16.mxu0 %v3110_v0  ;;  %v920_v31 = vand.u32 4294901760, %v874_v56  ;;  %v3718_v30 = vand.u32 4294901760, %v3495_v45  ;;  %v3736_v58 = vand.u32 4294901760, %v3495_v45 }
  0xf3   :  { %v3410_v16 = vsub.f32 %v874_v56, %v920_v31  ;;  %v3435_v56 = vsub.f32 %v878_v42, %v932_v43 }
  0xf4   :  { %2587 = vmatpush3.bf16.msra.mxu0 %v3110_v0  ;;  %v917_v0 = vand.u32 4294901760, %v873_v41 }
  0xf5   :  { %2589 = vmatprep.subr.bf16.mxu0 %v3113_v3  ;;  %v3714_v14 = vand.u32 4294901760, %v3410_v16 }
  0xf6   :  { %v3408_v62 = vsub.f32 %v873_v41, %v917_v0  ;;  %v3433_v41 = vsub.f32 %v877_v47, %v929_v51 }
  0xf7   :  { %v1088_v20 = vsub.f32 %v3410_v16, %v3714_v14 }
  0xf8   :  { %2591 = vmatpush3.bf16.msra.mxu0 %v3113_v3  ;;  %v3363_v3 = vpack.c.bf16 %v920_v31, %v917_v0  ;;  %v3715_v55 = vand.u32 4294901760, %v3408_v62  ;;  %v3462_v39 = vpack.c.bf16 %v3410_v16, %v3408_v62  ;;  %v3470_v35 = vpack.c.bf16 %v3435_v56, %v3433_v41 }
  0xf9   :  { %v1089_v61 = vand.u32 4294901760, %v1088_v20 }
  0xfa   :  { %2613 = vmatprep.subr.bf16.mxu1 %v3363_v3  ;;  %v1081_v15 = vsub.f32 %v3408_v62, %v3715_v55 }
  0xfb   :  { %2167 = vmatmul.mubr.f32.vlgmr.msra.gmra.mrb[0].mxu0 %v3070_v34  ;;  %v875_v34 = vld [vmem:[#allocation7 + $0x60] sm:$0xff]  ;;  %2615 = vmatpush3.bf16.msra.mxu1 %v3363_v3 }
  0xfc   :  { %2169 = vmatprep.mubr.f32.mxu0 %v3117_v6  ;;  %v876_v6 = vld [vmem:[#allocation7 + $0x68] sm:$0xff]  ;;  %v1082_v38 = vand.u32 4294901760, %v1081_v15  ;;  %v1702_v15 = vld [vmem:[%s3698_s2] ss:$0 sm:$0xff] }
  0xfd   :  { %v926_v63 = vand.u32 4294901760, %v876_v6 }
  0xfe   :  { %v3428_v17 = vpack.c.bf16 %v1089_v61, %v1082_v38 }
  0xff   :  { %2170 = vmatmul.mubr.f32.gmra.mrb[2].mxu0 %v3148_v19  ;;  %v923_v19 = vand.u32 4294901760, %v875_v34  ;;  %v3424_v22 = vsub.f32 %v876_v6, %v926_v63  ;;  %v3710_v6 = vand.u32 4294901760, %v3435_v56 }
 0x101   :  { %v3367_v2 = vpack.c.bf16 %v926_v63, %v923_v19  ;;  %v3422_v48 = vsub.f32 %v875_v34, %v923_v19  ;;  %v3712_v13 = vand.u32 4294901760, %v3424_v22  ;;  %v3711_v34 = vand.u32 4294901760, %v3433_v41 }
 0x102   :  { %v1116_v47 = vsub.f32 %v3435_v56, %v3710_v6 }
 0x103   :  { %2617 = vmatprep.subr.bf16.mxu1 %v3367_v2  ;;  %v3713_v10 = vand.u32 4294901760, %v3422_v48  ;;  %v1102_v0 = vsub.f32 %v3424_v22, %v3712_v13  ;;  %v1109_v63 = vsub.f32 %v3433_v41, %v3711_v34  ;;  %v3466_v27 = vpack.c.bf16 %v3424_v22, %v3422_v48 }
 0x104   :  { %2619 = vmatpush3.bf16.msra.mxu1 %v3367_v2  ;;  %v1117_v43 = vand.u32 4294901760, %v1116_v47 }
 0x105   :  { %2621 = vmatprep.subr.bf16.mxu1 %v3383_v8  ;;  %v1095_v18 = vsub.f32 %v3422_v48, %v3713_v10  ;;  %v1103_v19 = vand.u32 4294901760, %v1102_v0  ;;  %v1110_v51 = vand.u32 4294901760, %v1109_v63  ;;  %v1031_v0 = vand.u32 4294901760, %v3480_v33 }
 0x107   :  { %v1096_v31 = vand.u32 4294901760, %v1095_v18  ;;  %v3450_v21 = vpack.c.bf16 %v1117_v43, %v1110_v51  ;;  %v1024_v18 = vand.u32 4294901760, %v3475_v37  ;;  %v1032_v46 = vsub.f32 %v3480_v33, %v1031_v0 }
 0x108   :  { %2623 = vmatpush3.bf16.msra.mxu1 %v3383_v8 }
 0x109   :  { %2625 = vmatprep.subr.bf16.mxu1 %v3393_v53  ;;  %v3448_v42 = vpack.c.bf16 %v1103_v19, %v1096_v31  ;;  %v1025_v43 = vsub.f32 %v3475_v37, %v1024_v18 }
 0x10b   :  { %v1026_v34 = vand.u32 4294901760, %v1025_v43 }
 0x1ce   :  { %v2168_v20 = vpop.f32.mrb[0].mxu0 }
 0x1cf   :  { %v2784_v38 = vadd.f32 %v2168_v20, %v1702_v15  ;;  %v837_v61 = vpop.f32.mrb[1].mxu0 }
 0x1d0   :  { %v2785_v31 = vadd.f32 %v1702_v15, %v837_v61 }
 0x1d1   :  { %v860_v59 = vmax.f32 %v2784_v38, 0.0 }
 0x1d2   :  { %v859_v5 = vmax.f32 %v2785_v31, 0.0  ;;  %v2171_v19 = vpop.f32.mrb[2].mxu0  ;;  %v3515_v31 = vsub.f32 %v3258_v32, %v905_v54  ;;  %v1039_v54 = vsub.f32 %v3490_v26, %v3719_v50 }
 0x1d3   :  { %v3497_v63 = vand.u32 4294901760, %v860_v59  ;;  %v2786_v47 = vadd.f32 %v2171_v19, %v1702_v15  ;;  %v849_v51 = vpop.f32.mrb[3].mxu0  ;;  %v3520_v19 = vsub.f32 %v3260_v12, %v908_v36  ;;  %v1046_v12 = vsub.f32 %v3495_v45, %v3718_v30 }
 0x1d4   :  { %v3505_v9 = vand.u32 4294901760, %v859_v5  ;;  %v2787_v20 = vadd.f32 %v1702_v15, %v849_v51  ;;  %v1052_v43 = vand.u32 4294901760, %v3515_v31  ;;  %v1040_v40 = vand.u32 4294901760, %v1039_v54 }
 0x1d5   :  { %v3510_v38 = vsub.f32 %v860_v59, %v3497_v63  ;;  %v862_v61 = vmax.f32 %v2786_v47, 0.0  ;;  %v1033_v47 = vand.u32 4294901760, %v1032_v46  ;;  %v1059_v46 = vand.u32 4294901760, %v3520_v19 }
 0x1d6   :  { %v3523_v15 = vsub.f32 %v859_v5, %v3505_v9  ;;  %v861_v51 = vmax.f32 %v2787_v20, 0.0  ;;  %v1047_v30 = vand.u32 4294901760, %v1046_v12 }
 0x1d7   :  { %v3525_v6 = vand.u32 4294901760, %v862_v61  ;;  %v3720_v59 = vand.u32 4294901760, %v3510_v38  ;;  %v2628_v14 = vpack.c.bf16 %v1033_v47, %v1026_v34  ;;  %v1060_v34 = vsub.f32 %v3520_v19, %v1059_v46 }
 0x1d8   :  { %v3528_v13 = vand.u32 4294901760, %v861_v51  ;;  %v969_v32 = vand.u32 4294901760, %v3523_v15  ;;  %v2632_v12 = vpack.c.bf16 %v1047_v30, %v1040_v40  ;;  %v2664_v40 = vpack.c.bf16 %v3495_v45, %v3490_v26 }
 0x1d9   :  { %v3538_v36 = vsub.f32 %v862_v61, %v3525_v6  ;;  %v980_v5 = vsub.f32 %v3510_v38, %v3720_v59 }
 0x1da   :  { %v3546_v20 = vsub.f32 %v861_v51, %v3528_v13  ;;  %v970_v10 = vsub.f32 %v3523_v15, %v969_v32  ;;  %v1053_v51 = vsub.f32 %v3515_v31, %v1052_v43 }
 0x1db   :  { %v3721_v55 = vand.u32 4294901760, %v3538_v36  ;;  %v981_v50 = vand.u32 4294901760, %v980_v5 }
 0x1dc   :  { %v971_v61 = vand.u32 4294901760, %v970_v10  ;;  %v989_v49 = vand.u32 4294901760, %v3546_v20  ;;  %v1054_v5 = vand.u32 4294901760, %v1053_v51 }
 0x1dd   :  { %v1000_v59 = vsub.f32 %v3538_v36, %v3721_v55  ;;  %v1061_v55 = vand.u32 4294901760, %v1060_v34 }
 0x1de   :  { %2204 = vmatprep.mubr.f32.mxu1 %v971_v61  ;;  %v990_v10 = vsub.f32 %v3546_v20, %v989_v49 }
 0x1df   :  { %2205 = vmatmul.mubr.f32.vlgmr.msra.gmra.mrb[0].mxu1 %v981_v50  ;;  %v1001_v54 = vand.u32 4294901760, %v1000_v59  ;;  %v2636_v61 = vpack.c.bf16 %v1061_v55, %v1054_v5  ;;  %v2668_v55 = vpack.c.bf16 %v3520_v19, %v3515_v31 }
 0x1e0   :  { %2627 = vmatpush3.bf16.msra.mxu1 %v3393_v53  ;;  %v991_v47 = vand.u32 4294901760, %v990_v10  ;;  %v2660_v53 = vpack.c.bf16 %v3480_v33, %v3475_v37  ;;  %v3743_v37 = vand.u32 4294901760, %v3424_v22 }
 0x1e1   :  { %2629 = vmatprep.subr.bf16.mxu1 %v2628_v14 }
 0x1e2   :  { %2207 = vmatprep.mubr.f32.mxu1 %v991_v47 }
 0x1e3   :  { %2208 = vmatmul.mubr.f32.gmra.mrb[2].mxu1 %v1001_v54 }
 0x1e4   :  { %2631 = vmatpush3.bf16.msra.mxu1 %v2628_v14  ;;  %2242 = vmatprep.mubr.f32.mxu1 %v3505_v9  ;;  %v2720_v14 = vpack.c.bf16 %v1017_v60, %v1010_v7  ;;  %v2728_v7 = vpack.c.bf16 %v3736_v58, %v3735_v4  ;;  %v3737_v60 = vand.u32 4294901760, %v3538_v36 }
 0x1e5   :  { %2633 = vmatprep.subr.bf16.mxu1 %v2632_v12 }
 0x1e8   :  { %2635 = vmatpush3.bf16.msra.mxu1 %v2632_v12 }
 0x1e9   :  { %2637 = vmatprep.subr.bf16.mxu1 %v2636_v61 }
 0x1ec   :  { %2639 = vmatpush3.bf16.msra.mxu1 %v2636_v61 }
 0x1ed   :  { %2641 = vmatprep.subr.bf16.mxu1 %v3414_v23 }
 0x1f0   :  { %2643 = vmatpush3.bf16.msra.mxu1 %v3414_v23  ;;  %v2724_v23 = vpack.c.bf16 %v1031_v0, %v1024_v18 }
 0x1f1   :  { %2645 = vmatprep.subr.bf16.mxu1 %v3428_v17 }
 0x1f4   :  { %2647 = vmatpush3.bf16.msra.mxu1 %v3428_v17  ;;  %v3734_v17 = vand.u32 4294901760, %v3510_v38 }
 0x1f5   :  { %2649 = vmatprep.subr.bf16.mxu1 %v3448_v42 }
 0x1f8   :  { %2651 = vmatpush3.bf16.msra.mxu1 %v3448_v42  ;;  %v2732_v42 = vpack.c.bf16 %v1059_v46, %v1052_v43 }
 0x1f9   :  { %2653 = vmatprep.subr.bf16.mxu1 %v3450_v21 }
 0x1fc   :  { %2655 = vmatpush3.bf16.msra.mxu1 %v3450_v21  ;;  %v3739_v21 = vand.u32 4294901760, %v3398_v1  ;;  %v3745_v1 = vand.u32 4294901760, %v3435_v56 }
 0x1fd   :  { %2657 = vmatprep.subr.bf16.mxu1 %v3454_v44 }
 0x1ff   :  { %2243 = vmatmul.mubr.f32.vlgmr.msra.gmra.mrb[0].mxu1 %v3497_v63 }
 0x200   :  { %2245 = vmatprep.mubr.f32.mxu1 %v3528_v13  ;;  %2659 = vmatpush3.bf16.msra.mxu1 %v3454_v44 }
 0x201   :  { %2661 = vmatprep.subr.bf16.mxu1 %v2660_v53 }
 0x203   :  { %2246 = vmatmul.mubr.f32.gmra.mrb[2].mxu1 %v3525_v6 }
 0x204   :  { %2663 = vmatpush3.bf16.msra.mxu1 %v2660_v53  ;;  %2280 = vmatprep.mubr.f32.mxu1 %v3523_v15 }
 0x205   :  { %2665 = vmatprep.subr.bf16.mxu1 %v2664_v40 }
 0x208   :  { %2667 = vmatpush3.bf16.msra.mxu1 %v2664_v40 }
 0x209   :  { %2669 = vmatprep.subr.bf16.mxu1 %v2668_v55 }
 0x20c   :  { %2671 = vmatpush3.bf16.msra.mxu1 %v2668_v55 }
 0x20d   :  { %2673 = vmatprep.subr.bf16.mxu1 %v3458_v52 }
 0x210   :  { %2675 = vmatpush3.bf16.msra.mxu1 %v3458_v52  ;;  %v3740_v52 = vand.u32 4294901760, %v3408_v62 }
 0x211   :  { %2677 = vmatprep.subr.bf16.mxu1 %v3462_v39 }
 0x214   :  { %2679 = vmatpush3.bf16.msra.mxu1 %v3462_v39  ;;  %v3741_v39 = vand.u32 4294901760, %v3410_v16 }
 0x215   :  { %2681 = vmatprep.subr.bf16.mxu1 %v3466_v27 }
 0x218   :  { %2683 = vmatpush3.bf16.msra.mxu1 %v3466_v27  ;;  %v2740_v27 = vpack.c.bf16 %v3741_v39, %v3740_v52 }
 0x219   :  { %2685 = vmatprep.subr.bf16.mxu1 %v3470_v35 }
 0x21c   :  { %2687 = vmatpush3.bf16.msra.mxu1 %v3470_v35  ;;  %v3742_v35 = vand.u32 4294901760, %v3422_v48 }
 0x21d   :  { %2689 = vmatprep.subr.bf16.mxu1 %v3248_v11 }
 0x21e   :  { %v2744_v33 = vpack.c.bf16 %v3743_v37, %v3742_v35 }
 0x21f   :  { %2281 = vmatmul.mubr.f32.vlgmr.msra.gmra.mrb[0].mxu1 %v3510_v38 }
 0x220   :  { %2283 = vmatprep.mubr.f32.mxu1 %v3546_v20  ;;  %2691 = vmatpush3.bf16.msra.mxu1 %v3248_v11 }
 0x221   :  { %2693 = vmatprep.subr.bf16.mxu1 %v3256_v29 }
 0x223   :  { %2284 = vmatmul.mubr.f32.gmra.mrb[2].mxu1 %v3538_v36 }
 0x224   :  { %2695 = vmatpush3.bf16.msra.mxu1 %v3256_v29  ;;  %2318 = vmatprep.mubr.f32.mxu1 %v969_v32 }
 0x225   :  { %2697 = vmatprep.subr.bf16.mxu1 %v3271_v25 }
 0x228   :  { %2699 = vmatpush3.bf16.msra.mxu1 %v3271_v25 }
 0x229   :  { %2701 = vmatprep.subr.bf16.mxu1 %v3283_v24 }
 0x22c   :  { %2703 = vmatpush3.bf16.msra.mxu1 %v3283_v24 }
 0x22d   :  { %2705 = vmatprep.subr.bf16.mxu1 %v3359_v28 }
 0x230   :  { %2707 = vmatpush3.bf16.msra.mxu1 %v3359_v28 }
 0x231   :  { %2709 = vmatprep.subr.bf16.mxu1 %v3363_v3 }
 0x234   :  { %2711 = vmatpush3.bf16.msra.mxu1 %v3363_v3 }
 0x235   :  { %2713 = vmatprep.subr.bf16.mxu1 %v3367_v2 }
 0x238   :  { %2715 = vmatpush3.bf16.msra.mxu1 %v3367_v2 }
 0x239   :  { %2717 = vmatprep.subr.bf16.mxu1 %v3383_v8 }
 0x23c   :  { %2719 = vmatpush3.bf16.msra.mxu1 %v3383_v8 }
 0x23d   :  { %2721 = vmatprep.subr.bf16.mxu1 %v2720_v14 }
 0x23f   :  { %2319 = vmatmul.mubr.f32.vlgmr.msra.gmra.mrb[0].mxu1 %v3734_v17 }
 0x240   :  { %2321 = vmatprep.mubr.f32.mxu1 %v989_v49  ;;  %2723 = vmatpush3.bf16.msra.mxu1 %v2720_v14  ;;  %v3738_v49 = vand.u32 4294901760, %v3396_v57  ;;  %v3744_v57 = vand.u32 4294901760, %v3433_v41 }
 0x241   :  { %2725 = vmatprep.subr.bf16.mxu1 %v2724_v23 }
 0x242   :  { %v2736_v44 = vpack.c.bf16 %v3739_v21, %v3738_v49  ;;  %v2748_v18 = vpack.c.bf16 %v3745_v1, %v3744_v57 }
 0x243   :  { %2322 = vmatmul.mubr.f32.gmra.mrb[2].mxu1 %v3737_v60 }
 0x244   :  { %2727 = vmatpush3.bf16.msra.mxu1 %v2724_v23  ;;  %2356 = vmatprep.mubr.f32.mxu1 %v3505_v9 }
 0x245   :  { %2729 = vmatprep.subr.bf16.mxu1 %v2728_v7 }
 0x248   :  { %2731 = vmatpush3.bf16.msra.mxu1 %v2728_v7 }
 0x249   :  { %2733 = vmatprep.subr.bf16.mxu1 %v2732_v42 }
 0x24c   :  { %2735 = vmatpush3.bf16.msra.mxu1 %v2732_v42 }
 0x24d   :  { %2737 = vmatprep.subr.bf16.mxu1 %v2736_v44 }
 0x250   :  { %2739 = vmatpush3.bf16.msra.mxu1 %v2736_v44 }
 0x251   :  { %2741 = vmatprep.subr.bf16.mxu1 %v2740_v27 }
 0x254   :  { %2743 = vmatpush3.bf16.msra.mxu1 %v2740_v27 }
 0x255   :  { %2745 = vmatprep.subr.bf16.mxu1 %v2744_v33 }
 0x258   :  { %2747 = vmatpush3.bf16.msra.mxu1 %v2744_v33 }
 0x259   :  { %2749 = vmatprep.subr.bf16.mxu1 %v2748_v18 }
 0x25c   :  { %2751 = vmatpush3.bf16.msra.mxu1 %v2748_v18 }
 0x25d   :  { %2753 = vmatprep.subr.bf16.mxu1 %v3248_v11 }
 0x25f   :  { %2357 = vmatmul.mubr.f32.vlgmr.msra.gmra.mrb[0].mxu1 %v3497_v63 }
 0x260   :  { %2359 = vmatprep.mubr.f32.mxu1 %v3528_v13  ;;  %2755 = vmatpush3.bf16.msra.mxu1 %v3248_v11  ;;  %v1703_v11 = vld [vmem:[%s3700_s4] ss:$0 sm:$0xff]  ;;  %s2945_s4 = smov [#allocation8]  }
 0x261   :  { %2757 = vmatprep.subr.bf16.mxu1 %v3256_v29  ;;  %s1689_s8 = sshll.u32 %s2945_s4, 4  ;;  %s1690_s8 = int_to_ptr.vmem [resolvable:$true] %s1689_s8 }
 0x262   :  { %s2912_s9 = scalar_lea.vmem %s1690_s8, 512  ;;  %p2917_p11 = scmp.lt.s32.totalorder %s1690_s8, %s1690_s8 }
 0x263   :  { %2360 = vmatmul.mubr.f32.gmra.mrb[2].mxu1 %v3525_v6  ;;  %p2913_p10 = scmp.ne.s32.totalorder %s1690_s8, %s2912_s9  ;;  %p2918_p12 = scmp.lt.s32.totalorder %s2912_s9, %s2912_s9 }
 0x264   :  { %2759 = vmatpush3.bf16.msra.mxu1 %v3256_v29  ;;  %2394 = vmatprep.mubr.f32.mxu1 %v3505_v9 }
 0x265   :  { %2761 = vmatprep.subr.bf16.mxu1 %v3271_v25  ;;  %p2919_p13 = por %p2918_p12, %p2917_p11 }
 0x267   :  { %p2920_p0 = pnand %p2919_p13, %p2913_p10 }
 0x268   :  { %2763 = vmatpush3.bf16.msra.mxu1 %v3271_v25 }
 0x269   :  { %2765 = vmatprep.subr.bf16.mxu1 %v3283_v24 }
 0x26c   :  { %2767 = vmatpush3.bf16.msra.mxu1 %v3283_v24 }
 0x26d   :  { %2769 = vmatprep.subr.bf16.mxu1 %v3359_v28 }
 0x270   :  { %2771 = vmatpush3.bf16.msra.mxu1 %v3359_v28 }
 0x271   :  { %2773 = vmatprep.subr.bf16.mxu1 %v3363_v3 }
 0x274   :  { %2775 = vmatpush3.bf16.msra.mxu1 %v3363_v3 }
 0x275   :  { %2777 = vmatprep.subr.bf16.mxu1 %v3367_v2 }
 0x278   :  { %2779 = vmatpush3.bf16.msra.mxu1 %v3367_v2 }
 0x279   :  { %2781 = vmatprep.subr.bf16.mxu1 %v3383_v8 }
 0x27c   :  { %2783 = vmatpush3.bf16.msra.mxu1 %v3383_v8 }
 0x27f   :  { %2395 = vmatmul.mubr.f32.vlgmr.msra.gmra.mrb[0].mxu1 %v3497_v63 }
 0x280   :  { %2397 = vmatprep.mubr.f32.mxu1 %v3528_v13 }
 0x283   :  { %2398 = vmatmul.mubr.f32.gmra.mrb[2].mxu1 %v3525_v6 }
 0x352   :  { %v2396_v29 = vpop.f32.mrb[0].mxu1 }
 0x353   :  { %v1634_v25 = vpop.f32.mrb[1].mxu1  ;;  %v2788_v28 = vadd.f32 %v2396_v29, %v1703_v11 }
 0x354   :  { %v2789_v24 = vadd.f32 %v1703_v11, %v1634_v25 }
 0x355   :  { %v1657_v22 = vmul.f32 %v2788_v28, %v2788_v28 }
 0x356   :  { %v2399_v3 = vpop.f32.mrb[2].mxu1  ;;  %v1656_v2 = vmul.f32 %v2789_v24, %v2789_v24 }
 0x357   :  { %v1646_v62 = vpop.f32.mrb[3].mxu1  ;;  %v2790_v8 = vadd.f32 %v2399_v3, %v1703_v11 }
 0x358   :  { %v2791_v16 = vadd.f32 %v1703_v11, %v1646_v62  ;;  %1660 = vadd.xlane.f32.xlu0 %v1656_v2 }
 0x359   :  { %v1659_v13 = vmul.f32 %v2790_v8, %v2790_v8 }
 0x35a   :  { %v1658_v48 = vmul.f32 %v2791_v16, %v2791_v16 }
 0x35c   :  { %1664 = vadd.xlane.f32.xlu1 %v1658_v48  ;;  %1662 = vadd.xlane.f32.xlu0 %v1657_v22 }
 0x360   :  { %1666 = vadd.xlane.f32.xlu1 %v1659_v13 }
 0x3e5   :  { %v1661_v41 = vpop.xlane.xlu0 %1660 }
 0x3e6   :  { %v1668_v56 = vmax.f32 %v1661_v41, 1e-24 }
 0x3e8   :  { %2838 = vrsqrt.f32 %v1668_v56 }
 0x3e9   :  { %v1665_v6 = vpop.xlane.xlu1 %1664  ;;  %v1663_v0 = vpop.xlane.xlu0 %1662 }
 0x3ea   :  { %v1670_v26 = vmax.f32 %v1665_v6, 1e-24  ;;  %v1669_v45 = vmax.f32 %v1663_v0, 1e-24 }
 0x3ec   :  { %2840 = vrsqrt.f32 %v1670_v26 }
 0x3ed   :  { %2842 = vrsqrt.f32 %v1669_v45  ;;  %v1667_v63 = vpop.xlane.xlu1 %1666 }
 0x3ee   :  { %v1671_v9 = vmax.f32 %v1667_v63, 1e-24 }
 0x3f0   :  { %2844 = vrsqrt.f32 %v1671_v9 }
 0x3f2   :  { %v2839_v50 = vpop.eup %2838 }
 0x3f3   :  { %v1676_v30 = vmul.f32 %v2839_v50, %v2789_v24 }
 0x3f5   :  { %1680 = vst [vmem:[#allocation8] sm:$0xff] %v1676_v30 }
 0x3f6   :  { %v2841_v38 = vpop.eup %2840 }
 0x3f7   :  { %v2843_v31 = vpop.eup %2842  ;;  %v1678_v19 = vmul.f32 %v2841_v38, %v2791_v16 }
 0x3f8   :  { %v1677_v15 = vmul.f32 %v2843_v31, %v2788_v28 }
 0x3f9   :  { %1682 = vst [vmem:[#allocation8 + $0x10] sm:$0xff] %v1678_v19 }
 0x3fa   :  { %v2845_v59 = vpop.eup %2844  ;;  %1681 = vst [vmem:[#allocation8 + $0x8] sm:$0xff] %v1677_v15 }
 0x3fb   :  { %v1679_v32 = vmul.f32 %v2845_v59, %v2790_v8 }
 0x3fd   :  { %1683 = vst [vmem:[#allocation8 + $0x18] sm:$0xff] %v1679_v32 }
 0x3fe   :  { %2923 = shalt.err (!%p2920_p0)
}
 0x3ff   :  { %s2924_s12 = scalar_lea.hbm %s3701_s5, 512 }
 0x400   :  { %p2925_p1 = scmp.ne.s32.totalorder %s3701_s5, %s2924_s12  ;;  %p2928_p2 = scmp.lt.u32.totalorder %s2924_s12, %s3701_s5 }
 0x402   :  { %p2930_p3 = pnand %p2928_p2, %p2925_p1 }
 0x404   :  { %2933 = shalt.err (!%p2930_p3)
}
 0x405   :  { %1695 = dma.vmem_to_hbm [thread:$0]  %s1690_s8, 512, %s3701_s5, [#allocation4], %s2942_s30, %s2942_s30, %s2943_s6  }
 0x406   :  { %2938 = dma.done.wait [#allocation4], 512  }
 0x407   :  { %2939 = vsyncadd [#allocation4], 4294966784 }
 0x408   :  { %1699 = vsyncpa [#allocation3], 1 }
 0x409   :  { %1700 = vsyncpa [#allocation6], 1 }
 0x40a   :  { %1701 = vsyncpa [#allocation4], 1 }

</bundles_post_ra>
